<compile_context>
chip_gen: v7x
topology: tpu7x:2x2x1
jax: 0.10.0
libtpu: 0.0.40
codegen_flags: <defaults>
</compile_context>

<pallas_src>
import jax
import jax.numpy as jnp
from jax import lax
from jax.experimental import pallas as pl
from jax.experimental.pallas import tpu as pltpu


def _round_up(n: int, m: int) -> int:
    return ((n + m - 1) // m) * m


def _vmem_budget_bytes() -> int:
    """Generation-aware VMEM budget: ~75% of physical per-core VMEM.

    v5e/v6e (128 MiB physical) -> ~96 MiB; v7x (64 MiB per TC) -> 48 MiB.
    Falls back to the most conservative value if the query is unavailable.
    """
    cap = 64 * 1024 * 1024  # conservative default: v7x per-TC VMEM
    try:
        cap = int(pltpu.get_tpu_info().vmem_capacity_bytes)
    except Exception:
        pass
    return max(32 * 1024 * 1024, min((cap * 3) // 4, 112 * 1024 * 1024))


def _so_gram_kernel(x_ref, beta_ref, w_ref, out_ref, g_ref):
    """Single-pass Gram formulation.

    Grid = (K_pad // tk,): reduction over K tiles of the flattened weight.

    x_ref:    (1, C_pad)     f32     VMEM  -- random probe (row vector), zero padded
    beta_ref: (1,)           f32     SMEM  -- regularization strength
    w_ref:    (C_pad, tk)    W-dtype VMEM  -- current K-tile of W_flat
    out_ref:  (1, 1)         f32     VMEM  -- scalar result
    g_ref:    (C_pad, C_pad) f32     VMEM scratch -- Gram accumulator G = W W^T
    """
    k = pl.program_id(0)

    @pl.when(k == 0)
    def _():
        g_ref[...] = jnp.zeros_like(g_ref)

    # G += W_k @ W_k^T  (contraction on the last dim of both operands, the
    # standard q.k^T MXU pattern; f32 accumulation regardless of W dtype).
    w_blk = w_ref[...]
    g_ref[...] += lax.dot_general(
        w_blk, w_blk,
        dimension_numbers=(((1,), (1,)), ((), ())),
        preferred_element_type=jnp.float32,
    )

    # Epilogue: both power steps + norm ratio, fully on-chip.  G is symmetric,
    # so the row-vector form x G == (G x)^T is exact; identity folded to "- v".
    @pl.when(k == pl.num_programs(0) - 1)
    def _():
        g = g_ref[...]
        x = x_ref[...]
        ax = jnp.dot(x, g, preferred_element_type=jnp.float32) - x
        aax = jnp.dot(ax, g, preferred_element_type=jnp.float32) - ax
        num_sq = jnp.sum(aax * aax, keepdims=True)  # (1, 1)
        den_sq = jnp.sum(ax * ax, keepdims=True)    # (1, 1)
        # NOTE: faithful to the PyTorch reference: no epsilon on ||Ax||
        # (exactly orthonormal rows give 0/0 -> NaN there too).
        out_ref[...] = beta_ref[0] * jnp.sqrt(num_sq / den_sq)


def _so_two_pass_kernel(x_ref, beta_ref, w_ref, out_ref, acc_ref, vec_ref):
    """Two-pass streaming-matvec fallback for very large C (used when the
    Gram scratch / compute-BW crossover make the single-pass form unattractive).

    Grid = (2, K_pad // tk):
      axis 0 (p): power-iteration step (0: compute Ax, 1: compute AAx)
      axis 1 (k): reduction over K tiles of the flattened weight
    """
    p = pl.program_id(0)
    k = pl.program_id(1)
    last_k = pl.num_programs(1) - 1

    @pl.when(k == 0)
    def _():
        acc_ref[...] = jnp.zeros_like(acc_ref)

    @pl.when((p == 0) & (k == 0))
    def _():
        vec_ref[...] = x_ref[...]

    # acc += (v^T W_k) W_k^T  -> accumulates v^T (W W^T) over K tiles.
    # TODO(synk): for very large C on v5e, batch several probes/layers as extra
    # LHS rows so the M=1 matvec stops wasting 127/128 of the MXU array.
    w_blk = w_ref[...]
    v_b = vec_ref[...].astype(w_blk.dtype)
    vw = jnp.dot(v_b, w_blk, preferred_element_type=jnp.float32)
    acc_ref[...] += lax.dot_general(
        vw.astype(w_blk.dtype), w_blk,
        dimension_numbers=(((1,), (1,)), ((), ())),
        preferred_element_type=jnp.float32,
    )

    @pl.when((p == 0) & (k == last_k))
    def _():
        vec_ref[...] = acc_ref[...] - vec_ref[...]

    @pl.when((p == 1) & (k == last_k))
    def _():
        ax = vec_ref[...]
        aax = acc_ref[...] - ax
        num_sq = jnp.sum(aax * aax, keepdims=True)
        den_sq = jnp.sum(ax * ax, keepdims=True)
        out_ref[...] = beta_ref[0] * jnp.sqrt(num_sq / den_sq)


def so_regularizer(w_conv: jax.Array, x_probe: jax.Array, beta, *,
                   weight_dtype=jnp.float32, force_two_pass: bool = False) -> jax.Array:
    """beta * ||A^2 x|| / ||A x|| with A = W_flat W_flat^T - I, W_flat = W.view(C, -1)."""
    c = int(w_conv.shape[0])
    k = 1
    for d in w_conv.shape[1:]:
        k *= int(d)

    wdt = jnp.dtype(weight_dtype)
    itemsize = wdt.itemsize
    # bf16 packs two rows per sublane -> round C to 16 for sub-32-bit weights.
    sublane = 16 if itemsize < 4 else 8
    c_pad = _round_up(c, sublane)
    k_lane = _round_up(k, 128)

    vmem_budget = _vmem_budget_bytes()
    gram_bytes = c_pad * c_pad * 4

    # Single-pass Gram form while C is below the compute/BW crossover
    # (~240 v5e, ~600 v6e, ~310/TC v7x; break-even <= ~2x that) and the f32
    # Gram scratch fits comfortably; otherwise stream W twice (matvec form).
    use_gram = (not force_two_pass) and (c_pad <= 512) and (gram_bytes <= vmem_budget // 4)

    # Derive the K-tile width from the VMEM byte budget: double-buffered W
    # tiles + Gram scratch (if used) + slack for the small vectors/output.
    reserve = (gram_bytes if use_gram else 0) + (4 << 20)
    w_budget = max(vmem_budget - reserve, 2 * c_pad * 128 * itemsize)
    per_buf = w_budget // 2                                   # default double buffering
    tk_cap = (per_buf // (c_pad * itemsize)) // 128 * 128
    tk = min(k_lane, max(128, tk_cap))
    k_pad = _round_up(k_lane, tk)

    # Zero-padded, lane/sublane-aligned operands (padding is exact, see header).
    w_flat = w_conv.reshape(c, k).astype(weight_dtype)
    w_padded = jnp.zeros((c_pad, k_pad), dtype=weight_dtype).at[:c, :k].set(w_flat)

    x_row = jnp.zeros((1, c_pad), dtype=jnp.float32)
    x_row = x_row.at[0, :c].set(x_probe.reshape(c).astype(jnp.float32))
    beta_arr = jnp.asarray([beta], dtype=jnp.float32)

    # TODO(synk): to occupy both v7x TensorCores, split the K reduction across a
    # leading parallel/core_map axis (per-core partial Gram combined in an
    # epilogue) or batch several layers' (W, x, beta) into one pallas_call.
    if use_gram:
        out = pl.pallas_call(
            _so_gram_kernel,
            out_shape=jax.ShapeDtypeStruct((1, 1), jnp.float32),
            grid_spec=pltpu.PrefetchScalarGridSpec(
                num_scalar_prefetch=0,
                grid=(k_pad // tk,),
                in_specs=[
                    pl.BlockSpec((1, c_pad), lambda kk: (0, 0)),         # probe (resident)
                    pl.BlockSpec(memory_space=pltpu.MemorySpace.SMEM),   # beta scalar
                    pl.BlockSpec((c_pad, tk), lambda kk: (0, kk)),       # W K-tiles
                ],
                out_specs=pl.BlockSpec((1, 1), lambda kk: (0, 0)),
                scratch_shapes=[pltpu.VMEM((c_pad, c_pad), jnp.float32)],  # Gram acc
            ),
            compiler_params=pltpu.CompilerParams(
                dimension_semantics=("arbitrary",),       # sequential K reduction
                vmem_limit_bytes=vmem_budget,
            ),
        )(x_row, beta_arr, w_padded)
    else:
        out = pl.pallas_call(
            _so_two_pass_kernel,
            out_shape=jax.ShapeDtypeStruct((1, 1), jnp.float32),
            grid_spec=pltpu.PrefetchScalarGridSpec(
                num_scalar_prefetch=0,
                grid=(2, k_pad // tk),
                in_specs=[
                    pl.BlockSpec((1, c_pad), lambda p, kk: (0, 0)),      # probe (resident)
                    pl.BlockSpec(memory_space=pltpu.MemorySpace.SMEM),   # beta scalar
                    pl.BlockSpec((c_pad, tk), lambda p, kk: (0, kk)),    # W K-tiles
                ],
                out_specs=pl.BlockSpec((1, 1), lambda p, kk: (0, 0)),
                scratch_shapes=[
                    pltpu.VMEM((1, c_pad), jnp.float32),   # acc: v^T (W W^T)
                    pltpu.VMEM((1, c_pad), jnp.float32),   # vec: x, then Ax
                ],
            ),
            compiler_params=pltpu.CompilerParams(
                dimension_semantics=("arbitrary", "arbitrary"),
                vmem_limit_bytes=vmem_budget,
            ),
        )(x_row, beta_arr, w_padded)

    # Matches torch's final .squeeze() -> 0-d scalar.
    return out[0, 0]


if __name__ == "__main__":
    # Deterministic "parameters":
    #  - conv-style weight W of shape (C, S, H, W) = (8, 4, 3, 3)
    #  - probe vector x ~ U[0,1) of shape (C, 1)   (torch.rand equivalent)
    #  - beta = deterministic stand-in for param_controller.get_value()
    key = jax.random.PRNGKey(0)
    k_w, k_x = jax.random.split(key)

    C, S, H, Wd = 8, 4, 3, 3
    w_conv = jax.random.normal(k_w, (C, S, H, Wd), dtype=jnp.float32)
    x_probe = jax.random.uniform(k_x, (C, 1), dtype=jnp.float32)
    BETA = 1e-4

    # Pure-JAX f32 reference (PyTorch semantics).
    w_flat_ref = w_conv.reshape(C, -1)
    a_ref = w_flat_ref @ w_flat_ref.T - jnp.eye(C, dtype=jnp.float32)
    ax_ref = a_ref @ x_probe
    aax_ref = a_ref @ ax_ref
    expected = BETA * jnp.linalg.norm(aax_ref) / jnp.linalg.norm(ax_ref)

    # 1) Default: single-pass Gram path, f32 weights (tight tolerance).
    r_gram = jax.block_until_ready(so_regularizer(w_conv, x_probe, BETA))
    # 2) Large-C fallback: two-pass streaming matvec (forced here to test it).
    r_mv = jax.block_until_ready(
        so_regularizer(w_conv, x_probe, BETA, force_two_pass=True))
    # 3) Opt-in bandwidth mode: bf16 weights (looser tolerance by design).
    r_bf16 = jax.block_until_ready(
        so_regularizer(w_conv, x_probe, BETA, weight_dtype=jnp.bfloat16))

    for r in (r_gram, r_mv, r_bf16):
        assert r.shape == (), r
        assert bool(jnp.isfinite(r)), r
    # f32 paths: tolerance only covers MXU f32-pass rounding / reduction order.
    assert bool(jnp.allclose(r_gram, expected, rtol=2e-2)), (r_gram, expected)
    assert bool(jnp.allclose(r_mv, expected, rtol=2e-2)), (r_mv, expected)
    assert bool(jnp.allclose(r_bf16, expected, rtol=1e-1)), (r_bf16, expected)
    print("KERNEL_OK")
</pallas_src>

<mosaic_0001>
module attributes {stable_mosaic.version = 11 : i64} {
  func.func @_so_gram_kernel(%arg0: i32, %arg1: memref<1x8xf32, #tpu.memory_space<vmem>>, %arg2: memref<1xf32, #tpu.memory_space<smem>>, %arg3: memref<8x128xf32, #tpu.memory_space<vmem>>, %arg4: memref<1x1xf32, #tpu.memory_space<vmem>>, %arg5: memref<8x8xf32, #tpu.memory_space<vmem>>) attributes {dimension_semantics = [#tpu.dimension_semantics<arbitrary>], iteration_bounds = array<i64: 1>, scalar_prefetch = 0 : i64, scratch_operands = 1 : i64, tpu.core_type = #tpu.core_type<tc>, window_params = [{pipeline_mode = #tpu.pipeline_mode<synchronous>, transform_indices = @transform_0, window_bounds = array<i64: 1, 8>}, {transform_indices = @transform_1, window_bounds = array<i64: 1>}, {transform_indices = @transform_2, window_bounds = array<i64: 8, 128>}, {pipeline_mode = #tpu.pipeline_mode<synchronous>, transform_indices = @transform_3, window_bounds = array<i64: 1, 1>}]} {
    %c0_i32 = arith.constant 0 : i32
    %0 = arith.cmpi eq, %arg0, %c0_i32 : i32
    %1 = arith.extui %0 : i1 to i32
    %c0_i32_0 = arith.constant 0 : i32
    %2 = arith.cmpi ne, %1, %c0_i32_0 : i32
    scf.if %2 {
      %cst_8 = arith.constant 0.000000e+00 : f32
      %11 = vector.broadcast %cst_8 : f32 to vector<8x8xf32>
      %c0_9 = arith.constant 0 : index
      %c0_10 = arith.constant 0 : index
      %12 = vector.load %arg5[%c0_9, %c0_10] : memref<8x8xf32, #tpu.memory_space<vmem>>, vector<8x8xf32>
      tpu.vector_store %arg5[%c0_9, %c0_10], %11 {strides = array<i32>} : memref<8x8xf32, #tpu.memory_space<vmem>>, vector<8x8xf32>,
    } else {
    }
    %c0 = arith.constant 0 : index
    %c0_1 = arith.constant 0 : index
    %3 = vector.load %arg3[%c0, %c0_1] : memref<8x128xf32, #tpu.memory_space<vmem>>, vector<8x128xf32>
    %c0_2 = arith.constant 0 : index
    %c0_3 = arith.constant 0 : index
    %4 = vector.load %arg5[%c0_2, %c0_3] : memref<8x8xf32, #tpu.memory_space<vmem>>, vector<8x8xf32>
    %cst = arith.constant dense<0.000000e+00> : vector<8x8xf32>
    %5 = tpu.matmul %3, %3, %cst {dimension_numbers = #tpu.dot_dimension_numbers<[1], [1], [0], [0], [0, 0, 1, 0], [], []>} : vector<8x128xf32>, vector<8x128xf32>, vector<8x8xf32> -> vector<8x8xf32>
    %6 = arith.addf %4, %5 : vector<8x8xf32>
    %c0_4 = arith.constant 0 : index
    %c0_5 = arith.constant 0 : index
    %7 = vector.load %arg5[%c0_4, %c0_5] : memref<8x8xf32, #tpu.memory_space<vmem>>, vector<8x8xf32>
    tpu.vector_store %arg5[%c0_4, %c0_5], %6 {strides = array<i32>} : memref<8x8xf32, #tpu.memory_space<vmem>>, vector<8x8xf32>,
    %c0_i32_6 = arith.constant 0 : i32
    %8 = arith.cmpi eq, %arg0, %c0_i32_6 : i32
    %9 = arith.extui %8 : i1 to i32
    %c0_i32_7 = arith.constant 0 : i32
    %10 = arith.cmpi ne, %9, %c0_i32_7 : i32
    scf.if %10 {
      %c0_8 = arith.constant 0 : index
      %c0_9 = arith.constant 0 : index
      %11 = vector.load %arg5[%c0_8, %c0_9] : memref<8x8xf32, #tpu.memory_space<vmem>>, vector<8x8xf32>
      %c0_10 = arith.constant 0 : index
      %c0_11 = arith.constant 0 : index
      %12 = vector.load %arg1[%c0_10, %c0_11] : memref<1x8xf32, #tpu.memory_space<vmem>>, vector<1x8xf32>
      %cst_12 = arith.constant dense<0.000000e+00> : vector<1x8xf32>
      %13 = tpu.matmul %12, %11, %cst_12 {dimension_numbers = #tpu.dot_dimension_numbers<[1], [0], [0], [1], [0, 0, 1, 1], [], []>} : vector<1x8xf32>, vector<8x8xf32>, vector<1x8xf32> -> vector<1x8xf32>
      %14 = arith.subf %13, %12 : vector<1x8xf32>
      %cst_13 = arith.constant dense<0.000000e+00> : vector<1x8xf32>
      %15 = tpu.matmul %14, %11, %cst_13 {dimension_numbers = #tpu.dot_dimension_numbers<[1], [0], [0], [1], [0, 0, 1, 1], [], []>} : vector<1x8xf32>, vector<8x8xf32>, vector<1x8xf32> -> vector<1x8xf32>
      %16 = arith.subf %15, %14 : vector<1x8xf32>
      %17 = arith.mulf %16, %16 : vector<1x8xf32>
      %18 = vector.shape_cast %17 : vector<1x8xf32> to vector<1x1x8xf32>
      %cst_14 = arith.constant dense<0.000000e+00> : vector<1xf32>
      %19 = vector.multi_reduction <add>, %18, %cst_14 [1, 2] : vector<1x1x8xf32> to vector<1xf32>
      %20 = vector.shape_cast %19 : vector<1xf32> to vector<1x1x1xf32>
      %21 = vector.extract %20[0, 0, 0] : f32 from vector<1x1x1xf32>
      %22 = vector.broadcast %21 : f32 to vector<1x1xf32>
      %23 = arith.mulf %14, %14 : vector<1x8xf32>
      %24 = vector.shape_cast %23 : vector<1x8xf32> to vector<1x1x8xf32>
      %cst_15 = arith.constant dense<0.000000e+00> : vector<1xf32>
      %25 = vector.multi_reduction <add>, %24, %cst_15 [1, 2] : vector<1x1x8xf32> to vector<1xf32>
      %26 = vector.shape_cast %25 : vector<1xf32> to vector<1x1x1xf32>
      %27 = vector.extract %26[0, 0, 0] : f32 from vector<1x1x1xf32>
      %28 = vector.broadcast %27 : f32 to vector<1x1xf32>
      %c0_16 = arith.constant 0 : index
      %29 = memref.load %arg2[%c0_16] : memref<1xf32, #tpu.memory_space<smem>>
      %30 = arith.divf %22, %28 : vector<1x1xf32>
      %31 = math.sqrt %30 : vector<1x1xf32>
      %32 = vector.broadcast %29 : f32 to vector<1x1xf32>
      %33 = arith.mulf %32, %31 : vector<1x1xf32>
      %c0_17 = arith.constant 0 : index
      %c0_18 = arith.constant 0 : index
      %34 = vector.load %arg4[%c0_17, %c0_18] : memref<1x1xf32, #tpu.memory_space<vmem>>, vector<1x1xf32>
      tpu.vector_store %arg4[%c0_17, %c0_18], %33 {strides = array<i32>} : memref<1x1xf32, #tpu.memory_space<vmem>>, vector<1x1xf32>,
    } else {
    }
    return
  }
  func.func @transform_0(%arg0: i32) -> (i32, i32) {
    %c0_i32 = arith.constant 0 : i32
    %c0_i32_0 = arith.constant 0 : i32
    %c0_i32_1 = arith.constant 0 : i32
    return %c0_i32, %c0_i32_0 : i32, i32
  }
  func.func @transform_1(%arg0: i32) -> i32 {
    %c0_i32 = arith.constant 0 : i32
    %c0_i32_0 = arith.constant 0 : i32
    return %c0_i32 : i32
  }
  func.func @transform_2(%arg0: i32) -> (i32, i32) {
    %c0_i32 = arith.constant 0 : i32
    %c0_i32_0 = arith.constant 0 : i32
    return %c0_i32, %arg0 : i32, i32
  }
  func.func @transform_3(%arg0: i32) -> (i32, i32) {
    %c0_i32 = arith.constant 0 : i32
    %c0_i32_0 = arith.constant 0 : i32
    %c0_i32_1 = arith.constant 0 : i32
    return %c0_i32, %c0_i32_0 : i32, i32
  }
}

</mosaic_0001>

<bundles_post_ra>
// kernel: tpu_custom_call.1
= control target key start
LH: loop header
LB: loop body
LE: loop exit
PB: predicated region body
PF: predicated region fallthrough
CT: control target
= control target key end

     0   :  { %9 = vsyncpa [#allocation5], 0  ;;  %s460_s0 = inlined_call_operand.vmem [shape: f32[1,8], index: 0, kind: input, shape index: {}]   ;;  %s461_s1 = inlined_call_operand.<no memory space> [shape: f32[1], index: 1, kind: input, shape index: {}]   ;;  %s462_s2 = inlined_call_operand.hbm [shape: f32[8,128], index: 2, kind: input, shape index: {}]   ;;  %s463_s3 = inlined_call_operand.hbm [shape: f32[1,1], index: 3, kind: output, shape index: {}]  }
   0x1   :  { %10 = vsyncpa [#allocation6], 0  ;;  %s399_s12 = smov [#allocation4]   ;;  %s351_s16 = scalar_lea.hbm %s462_s2, 128 }
   0x2   :  { %s21_s13 = sshll.u32 %s399_s12, 4  ;;  %p352_p0 = scmp.ne.s32.totalorder %s462_s2, %s351_s16  ;;  %s22_s13 = int_to_ptr.vmem [resolvable:$true] %s21_s13 }
   0x3   :  { %p355_p1 = scmp.lt.u32.totalorder %s351_s16, %s462_s2 }
   0x5   :  { %p357_p2 = pnand %p355_p1, %p352_p0 }
   0x7   :  { %360 = shalt.err (!%p357_p2)
}
   0x8   :  { %s361_s21 = scalar_lea.vmem %s22_s13, 128  ;;  %p366_p4 = scmp.lt.s32.totalorder %s22_s13, %s22_s13 }
   0x9   :  { %p362_p3 = scmp.ne.s32.totalorder %s22_s13, %s361_s21  ;;  %p367_p5 = scmp.lt.s32.totalorder %s361_s21, %s361_s21 }
   0xb   :  { %p368_p6 = por %p367_p5, %p366_p4 }
   0xd   :  { %p369_p7 = pnand %p368_p6, %p362_p3 }
   0xf   :  { %372 = shalt.err (!%p369_p7)
}
  0x10   :  { %24 = dma.hbm_to_vmem [thread:$0]  %s462_s2, 128, %s22_s13, [#allocation5]  }
  0x11   :  { %395 = dma.done.wait [#allocation5], 128  }
  0x12   :  { %396 = vsyncadd [#allocation5], 4294967168  ;;  %vm32_vm0 = vcmask 64512   ;;  %v400_v0 = vmov 0.0   ;;  %vm401_vm1 = vmmov 0   ;;  %v34_v1 = vld [vmem:[#allocation4] sm:$0xff]  ;;  %v297_v39 = vstv %s461_s1 }
  0x13   :  { %324 = vmatprep.subr.mxu0 %v400_v0  ;;  %326 = vmatprep.mubr.msk.f32.mxu0 %vm401_vm1, %v400_v0  ;;  %33 = vst.msk [vmem:[#allocation2] sm:$0xff] %vm32_vm0, %v400_v0  ;;  %v113_v6 = vld [vmem:[%s460_s0] sm:$0x1]  ;;  %vm263_vm2 = vcmask 57344   ;;  %s402_s28 = smov [#allocation7]   ;;  %vm299_vm5 = vcmask 0  }
  0x14   :  { %329 = vmatprep.subr.mxu1 %v400_v0  ;;  %331 = vmatprep.mubr.msk.f32.mxu1 %vm401_vm1, %v400_v0  ;;  %s307_s29 = sshll.u32 %s402_s28, 4  ;;  %s308_s29 = int_to_ptr.vmem [resolvable:$true] %s307_s29 }
  0x15   :  { %325 = vmatpush3.xpose.msra.mxu0 %v34_v1  ;;  %s373_s30 = scalar_lea.vmem %s308_s29, 16  ;;  %s377_s4 = scalar_lea.vmem %s308_s29, 32 }
  0x16   :  { %p374_p8 = scmp.ne.s32.totalorder %s308_s29, %s373_s30  ;;  %p378_p9 = scmp.lt.s32.totalorder %s308_s29, %s308_s29 }
  0x17   :  { %p379_p10 = scmp.lt.s32.totalorder %s377_s4, %s373_s30 }
  0x18   :  { %327 = vmatmul.mubr.f32.vlgmr.msra.gmra.mrb[0].mxu0 %v34_v1 }
  0x19   :  { %p380_p11 = por %p379_p10, %p378_p9 }
  0x1a   :  { %v35_v2 = vld [vmem:[#allocation2] sm:$0xff] }
  0x1b   :  { %p381_p12 = pnand %p380_p11, %p374_p8 }
  0xeb   :  { %v102_v3 = vpop.f32.mrb[0].mxu0 }
  0xec   :  { %v106_v4 = vadd.f32 %v102_v3, %v35_v2  ;;  %v328_v5 = vpop.f32.mrb[1].mxu0 }
  0xee   :  { %108 = vst.msk [vmem:[#allocation2] sm:$0xff] %vm32_vm0, %v106_v4 }
  0xf5   :  { %v112_v7 = vld [vmem:[#allocation2] sm:$0xff] }
  0xf6   :  { %330 = vmatpush3.msra.mxu1 %v112_v7 }
  0xf7   :  { %332 = vmatmul.mubr.msk.f32.vlgmr.msra.gmra.mrb[0].mxu1 %vm32_vm0, %v113_v6  ;;  %334 = vmatprep.subr.mxu1 %v400_v0 }
  0xf8   :  { %335 = vmatpush3.msra.mxu1 %v112_v7  ;;  %336 = vmatprep.mubr.msk.f32.mxu1 %vm401_vm1, %v400_v0 }
 0x1ca   :  { %v183_v8 = vpop.f32.mrb[0].mxu1 }
 0x1cb   :  { %v187_v9 = vsub.f32 %v183_v8, %v113_v6  ;;  %v333_v10 = vpop.f32.mrb[1].mxu1 }
 0x1cd   :  { %337 = vmatmul.mubr.msk.f32.vlgmr.msra.gmra.mrb[2].mxu1 %vm32_vm0, %v187_v9  ;;  %v275_v16 = vmul.f32 %v187_v9, %v187_v9 }
 0x1cf   :  { %v276_v17 = vsel %vm263_vm2, %v275_v16, 0.0 }
 0x2a0   :  { %v257_v11 = vpop.f32.mrb[2].mxu1 }
 0x2a1   :  { %v261_v12 = vsub.f32 %v257_v11, %v187_v9  ;;  %v338_v13 = vpop.f32.mrb[3].mxu1 }
 0x2a3   :  { %v262_v14 = vmul.f32 %v261_v12, %v261_v12 }
 0x2a5   :  { %v264_v15 = vsel %vm263_vm2, %v262_v14, 0.0 }
 0x2a6   :  { %265 = vadd.xlane.f32.xlu0 %v264_v15 }
 0x2aa   :  { %277 = vadd.xlane.f32.xlu0 %v276_v17 }
 0x333   :  { %v266_v18 = vpop.xlane.xlu0 %265 }
 0x334   :  { %v267_v19 = vrot.slane %v266_v18, 4 }
 0x336   :  { %v268_v20 = vadd.f32 %v267_v19, %v266_v18 }
 0x337   :  { %v278_v21 = vpop.xlane.xlu0 %277 }
 0x338   :  { %v269_v22 = vrot.slane %v268_v20, 2  ;;  %v279_v23 = vrot.slane %v278_v21, 4 }
 0x33a   :  { %v280_v24 = vadd.f32 %v279_v23, %v278_v21  ;;  %v270_v25 = vadd.f32 %v269_v22, %v268_v20 }
 0x33c   :  { %v281_v26 = vrot.slane %v280_v24, 2  ;;  %v271_v27 = vrot.slane %v270_v25, 1 }
 0x33e   :  { %v282_v28 = vadd.f32 %v281_v26, %v280_v24  ;;  %v272_v29 = vadd.f32 %v271_v27, %v270_v25 }
 0x340   :  { %339 = vpush %v272_v29  ;;  %v283_v30 = vrot.slane %v282_v28, 1 }
 0x342   :  { %v284_v31 = vadd.f32 %v283_v30, %v282_v28 }
 0x344   :  { %341 = vpush %v284_v31 }
 0x371   :  { %s340_s0 = spop %339 }
 0x372   :  { %v274_v34 = vstv %s340_s0 }
 0x375   :  { %s342_s25 = spop %341 }
 0x376   :  { %v286_v32 = vstv %s342_s25 }
 0x377   :  { %347 = vrcp.f32 %v286_v32 }
 0x381   :  { %v348_v33 = vpop.eup %347 }
 0x382   :  { %v289_v35 = vmul.f32 %v348_v33, %v274_v34 }
 0x384   :  { %349 = vrsqrt.f32 %v289_v35  ;;  %vm292_vm3 = vcmp.eq.f32.partialorder %v289_v35, inf  ;;  %v295_v38 = vand.u32 2147483648, %v289_v35  ;;  %vm294_vm4 = vcmp.eq.f32.partialorder %v289_v35, 0.0 }
 0x38e   :  { %v350_v36 = vpop.eup %349 }
 0x38f   :  { %v291_v37 = vmul.f32 %v350_v36, %v289_v35 }
 0x391   :  { %v293_v40 = vsel %vm292_vm3, %v289_v35, %v291_v37 }
 0x392   :  { %v296_v41 = vsel %vm294_vm4, %v295_v38, %v293_v40 }
 0x393   :  { %v298_v42 = vmul.f32 %v297_v39, %v296_v41 }
 0x395   :  { %300 = vst.msk [vmem:[#allocation7] sm:$0x1] %vm299_vm5, %v298_v42 }
 0x396   :  { %384 = shalt.err (!%p381_p12)
}
 0x397   :  { %s385_s1 = scalar_lea.hbm %s463_s3, 16 }
 0x398   :  { %p386_p13 = scmp.ne.s32.totalorder %s463_s3, %s385_s1  ;;  %p389_p0 = scmp.lt.u32.totalorder %s385_s1, %s463_s3 }
 0x39a   :  { %p391_p1 = pnand %p389_p0, %p386_p13 }
 0x39c   :  { %394 = shalt.err (!%p391_p1)
}
 0x39d   :  { %310 = dma.vmem_to_hbm [thread:$0]  %s308_s29, 16, %s463_s3, [#allocation6]  }
 0x39e   :  { %397 = dma.done.wait [#allocation6], 16  }
 0x39f   :  { %398 = vsyncadd [#allocation6], 4294967280 }
 0x3a0   :  { %314 = vsyncpa [#allocation5], 1 }
 0x3a1   :  { %315 = vsyncpa [#allocation6], 1 }

</bundles_post_ra>
